<compile_context>
chip_gen: v6e
topology: v6e:2x2x1
jax: 0.10.0
libtpu: 0.0.40
codegen_flags: <defaults>
</compile_context>

<pallas_src>
import jax
import jax.numpy as jnp
from jax.experimental import pallas as pl
from jax.experimental.pallas import tpu as pltpu

# ---------------------------------------------------------------- config ----
B, C, H, W = 2, 4, 16, 16          # small NCHW input, like the PyTorch module would see
F = C * H * W                       # flattened feature dim (= 1024)
D_POSE, D_ORIENT = 24, 8            # two MTL task heads
D_OUT = D_POSE + D_ORIENT           # total model output dim (= 32)


# ---------------------------------------------------------------- kernel ----
def mtl_kernel(x_ref, w_ref, b_ref, t_ref, logvar_ref, out_ref, loss_ref):
    # --- model: outputs = x @ W + b   (single MXU matmul, f32 accumulation) ---
    # TODO(synk): for a realistic backbone (large F / batch), cast x & W to bf16
    # for the native MXU datapath and tile K with an f32 VMEM accumulator
    # (grid axis over K marked "arbitrary"); at these toy shapes the kernel is
    # overhead-bound and f32 keeps numerics identical to the PyTorch reference.
    out = jnp.dot(x_ref[...], w_ref[...],
                  preferred_element_type=jnp.float32) + b_ref[...]   # [B, D_OUT]
    out_ref[...] = out

    # --- loss_head: fused uncertainty-weighted per-task MSE ---
    s_pose = logvar_ref[0]            # scalar log-variances from SMEM
    s_orient = logvar_ref[1]
    # Fold exp(-s) (EUP, issued early so it hides under the reduction) and the
    # per-task 1/(B*D) normalisation into a single per-lane weight vector.
    w_pose = jnp.exp(-s_pose) * (1.0 / (B * D_POSE))
    w_orient = jnp.exp(-s_orient) * (1.0 / (B * D_ORIENT))

    diff = out - t_ref[...]                                           # [B, D_OUT]
    col = jax.lax.broadcasted_iota(jnp.int32, diff.shape, dimension=1)
    # Logical lane extent is exactly D_OUT, so the else-branch covers only the
    # orientation lanes (no padded-lane garbage enters the reduction).
    lane_w = jnp.where(col < D_POSE, w_pose, w_orient)

    # Single XLU cross-lane reduction instead of two.
    loss_ref[0] = jnp.sum(diff * diff * lane_w) + s_pose + s_orient


# --------------------------------------------------------------- wrapper ----
def pedrec_mtl_wrapper_forward(inputs_nchw, targets, weight, bias, log_vars):
    """Returns (outputs, loss) like PedRecNetMTLWrapper.forward."""
    x_flat = inputs_nchw.reshape(inputs_nchw.shape[0], -1).astype(jnp.float32)  # [B, F]

    outputs, loss = pl.pallas_call(
        mtl_kernel,
        out_shape=(
            jax.ShapeDtypeStruct((B, D_OUT), jnp.float32),   # outputs (VMEM)
            jax.ShapeDtypeStruct((1,), jnp.float32),         # scalar loss (SMEM)
        ),
        # Gridless call: no grid loop, no index maps, no double-buffered DMA —
        # every operand lives whole in its memory space for the single shot.
        in_specs=[
            pl.BlockSpec(memory_space=pltpu.MemorySpace.VMEM),   # x       [B, F]
            pl.BlockSpec(memory_space=pltpu.MemorySpace.VMEM),   # W       [F, D_OUT]
            pl.BlockSpec(memory_space=pltpu.MemorySpace.VMEM),   # bias    [1, D_OUT]
            pl.BlockSpec(memory_space=pltpu.MemorySpace.VMEM),   # targets [B, D_OUT]
            pl.BlockSpec(memory_space=pltpu.MemorySpace.SMEM),   # log-variances [2]
        ],
        out_specs=(
            pl.BlockSpec(memory_space=pltpu.MemorySpace.VMEM),   # outputs
            pl.BlockSpec(memory_space=pltpu.MemorySpace.SMEM),   # scalar loss
        ),
    )(x_flat, weight, bias, targets, log_vars)

    return outputs, loss[0]


# ------------------------------------------------------------------ main ----
if __name__ == "__main__":
    key = jax.random.PRNGKey(0)
    k_x, k_t, k_w = jax.random.split(key, 3)

    # deterministic example inputs / targets (PyTorch-style NCHW input)
    inputs = jax.random.normal(k_x, (B, C, H, W), dtype=jnp.float32)
    targets = jax.random.normal(k_t, (B, D_OUT), dtype=jnp.float32)

    # deterministic synthetic parameters (no checkpoint loading)
    weight = jax.random.normal(k_w, (F, D_OUT), dtype=jnp.float32) * 0.02
    bias = jnp.zeros((1, D_OUT), dtype=jnp.float32)
    log_vars = jnp.zeros((2,), dtype=jnp.float32)    # Kendall MTL log-variances

    # TODO(synk): the real PedRecNet backbone is a ResNet-based multi-branch net;
    # here it is instantiated as a single linear model per the synthetic-kernel brief.

    outputs, loss = pedrec_mtl_wrapper_forward(inputs, targets, weight, bias, log_vars)
    jax.block_until_ready((outputs, loss))

    # pure-JAX reference check
    x_flat = inputs.reshape(B, -1)
    ref_out = x_flat @ weight + bias
    sq = (ref_out - targets) ** 2
    ref_mse_p = jnp.mean(sq[:, :D_POSE])
    ref_mse_o = jnp.mean(sq[:, D_POSE:])
    ref_loss = (jnp.exp(-log_vars[0]) * ref_mse_p + log_vars[0]
                + jnp.exp(-log_vars[1]) * ref_mse_o + log_vars[1])
    assert jnp.allclose(outputs, ref_out, atol=1e-4, rtol=1e-4)
    assert jnp.allclose(loss, ref_loss, atol=1e-4, rtol=1e-4)

    print("KERNEL_OK")
</pallas_src>

<mosaic_0001>
module attributes {stable_mosaic.version = 11 : i64} {
  func.func @mtl_kernel(%arg0: memref<2x1024xf32, #tpu.memory_space<vmem>>, %arg1: memref<1024x32xf32, #tpu.memory_space<vmem>>, %arg2: memref<1x32xf32, #tpu.memory_space<vmem>>, %arg3: memref<2x32xf32, #tpu.memory_space<vmem>>, %arg4: memref<2xf32, #tpu.memory_space<smem>>, %arg5: memref<2x32xf32, #tpu.memory_space<vmem>>, %arg6: memref<1xf32, #tpu.memory_space<smem>>) attributes {dimension_semantics = [], scalar_prefetch = 0 : i64, scratch_operands = 0 : i64, tpu.core_type = #tpu.core_type<tc>} {
    %c0 = arith.constant 0 : index
    %c0_0 = arith.constant 0 : index
    %0 = vector.load %arg0[%c0, %c0_0] : memref<2x1024xf32, #tpu.memory_space<vmem>>, vector<2x1024xf32>
    %c0_1 = arith.constant 0 : index
    %c0_2 = arith.constant 0 : index
    %1 = vector.load %arg1[%c0_1, %c0_2] : memref<1024x32xf32, #tpu.memory_space<vmem>>, vector<1024x32xf32>
    %cst = arith.constant dense<0.000000e+00> : vector<2x32xf32>
    %2 = tpu.matmul %0, %1, %cst {dimension_numbers = #tpu.dot_dimension_numbers<[1], [0], [0], [1], [0, 0, 1, 1], [], []>} : vector<2x1024xf32>, vector<1024x32xf32>, vector<2x32xf32> -> vector<2x32xf32>
    %c0_3 = arith.constant 0 : index
    %c0_4 = arith.constant 0 : index
    %3 = vector.load %arg2[%c0_3, %c0_4] : memref<1x32xf32, #tpu.memory_space<vmem>>, vector<1x32xf32>
    %4 = vector.broadcast %3 : vector<1x32xf32> to vector<2x32xf32>
    %5 = arith.addf %2, %4 : vector<2x32xf32>
    %c0_5 = arith.constant 0 : index
    %c0_6 = arith.constant 0 : index
    %6 = vector.load %arg5[%c0_5, %c0_6] : memref<2x32xf32, #tpu.memory_space<vmem>>, vector<2x32xf32>
    tpu.vector_store %arg5[%c0_5, %c0_6], %5 {strides = array<i32>} : memref<2x32xf32, #tpu.memory_space<vmem>>, vector<2x32xf32>,
    %c0_7 = arith.constant 0 : index
    %7 = memref.load %arg4[%c0_7] : memref<2xf32, #tpu.memory_space<smem>>
    %c1 = arith.constant 1 : index
    %8 = memref.load %arg4[%c1] : memref<2xf32, #tpu.memory_space<smem>>
    %cst_8 = arith.constant 0.000000e+00 : f32
    %9 = arith.subf %cst_8, %7 : f32
    %10 = math.exp %9 : f32
    %cst_9 = arith.constant 0.020833334 : f32
    %11 = arith.mulf %10, %cst_9 : f32
    %cst_10 = arith.constant 0.000000e+00 : f32
    %12 = arith.subf %cst_10, %8 : f32
    %13 = math.exp %12 : f32
    %cst_11 = arith.constant 6.250000e-02 : f32
    %14 = arith.mulf %13, %cst_11 : f32
    %c0_12 = arith.constant 0 : index
    %c0_13 = arith.constant 0 : index
    %15 = vector.load %arg3[%c0_12, %c0_13] : memref<2x32xf32, #tpu.memory_space<vmem>>, vector<2x32xf32>
    %16 = arith.subf %5, %15 : vector<2x32xf32>
    %17 = tpu.iota {dimensions = array<i32: 1>} : vector<2x32xi32>
    %c24_i32 = arith.constant 24 : i32
    %18 = vector.broadcast %c24_i32 : i32 to vector<2x32xi32>
    %19 = arith.cmpi slt, %17, %18 : vector<2x32xi32>
    %20 = vector.broadcast %11 : f32 to vector<2x32xf32>
    %21 = vector.broadcast %14 : f32 to vector<2x32xf32>
    %22 = arith.select %19, %20, %21 : vector<2x32xi1>, vector<2x32xf32>
    %23 = arith.mulf %16, %16 : vector<2x32xf32>
    %24 = arith.mulf %23, %22 : vector<2x32xf32>
    %25 = vector.shape_cast %24 : vector<2x32xf32> to vector<1x2x32xf32>
    %cst_14 = arith.constant dense<0.000000e+00> : vector<1xf32>
    %26 = vector.multi_reduction <add>, %25, %cst_14 [1, 2] : vector<1x2x32xf32> to vector<1xf32>
    %27 = vector.shape_cast %26 : vector<1xf32> to vector<1x1x1xf32>
    %28 = vector.extract %27[0, 0, 0] : f32 from vector<1x1x1xf32>
    %29 = arith.addf %28, %7 : f32
    %30 = arith.addf %29, %8 : f32
    %c0_15 = arith.constant 0 : index
    %31 = memref.load %arg6[%c0_15] : memref<1xf32, #tpu.memory_space<smem>>
    memref.store %30, %arg6[%c0_15] : memref<1xf32, #tpu.memory_space<smem>>
    return
  }
}

</mosaic_0001>

<bundles_post_ra>
// kernel: tpu_custom_call.1
= control target key start
LH: loop header
LB: loop body
LE: loop exit
PB: predicated region body
PF: predicated region fallthrough
CT: control target
= control target key end

     0   :  { %12 = vsyncpa [#allocation5], 0  ;;  %s1230_s0 = inlined_call_operand.vmem [shape: f32[2,1024], index: 0, kind: input, shape index: {}]   ;;  %s1231_s1 = inlined_call_operand.vmem [shape: f32[1024,32], index: 1, kind: input, shape index: {}]   ;;  %s1232_s2 = inlined_call_operand.vmem [shape: f32[1,32], index: 2, kind: input, shape index: {}]   ;;  %s1233_s3 = inlined_call_operand.vmem [shape: f32[2,32], index: 3, kind: input, shape index: {}]   ;;  %s1234_s4 = inlined_call_operand.vmem [shape: f32[2], index: 4, kind: input, shape index: {}]   ;;  %s1235_s5 = inlined_call_operand.hbm [shape: f32[2,32], index: 5, kind: output, shape index: {0}]   ;;  %s1236_s6 = inlined_call_operand.hbm [shape: f32[1], index: 6, kind: output, shape index: {1}]  }
   0x1   :  { %13 = vsyncpa [#allocation3], 0 }
   0x2   :  { %14 = vsyncpa [#allocation4], 0  ;;  %s29_s23 = sshll.u32 %s1234_s4, 4  ;;  %s30_s23 = int_to_ptr.vmem [resolvable:$true] %s29_s23 }
   0x3   :  { %s724_s24 = scalar_lea.vmem %s30_s23, 16  ;;  %p729_p1 = scmp.lt.s32.totalorder %s30_s23, %s30_s23 }
   0x4   :  { %p725_p0 = scmp.ne.s32.totalorder %s30_s23, %s724_s24  ;;  %p730_p2 = scmp.lt.s32.totalorder %s724_s24, %s724_s24 }
   0x6   :  { %p731_p3 = por %p730_p2, %p729_p1 }
   0x8   :  { %p732_p4 = pnand %p731_p3, %p725_p0 }
   0xa   :  { %735 = shalt.err (!%p732_p4)
}
   0xb   :  { %s770_s25 = smov [#allocation2]  }
   0xc   :  { %32 = dma.vmem_to_smem %s30_s23, 16, %s770_s25, [#allocation5]  }
   0xd   :  { %764 = dma.done.wait [#allocation5], 16  }
   0xe   :  { %765 = vsyncadd [#allocation5], 4294967280 }
   0xf   :  { %36 = sfence }
  0x10   :  { %v70_v0 = vld [vmem:[%s1231_s1 + $0xf8] sm:$0xff]  ;;  %v69_v4 = vld [vmem:[%s1231_s1 + $0xf0] sm:$0xff]  ;;  %s830_s13 = sld [smem:[#allocation2]]  ;;  %v68_v8 = vld [vmem:[%s1231_s1 + $0xe8] sm:$0xff]  ;;  %v771_v34 = vmov 1983009808   ;;  %v180_v36 = vlaneseq }
  0x11   :  { %v102_v1 = vld [vmem:[%s1231_s1 + $0x1f8] sm:$0xff]  ;;  %568 = vmatprep.subr.mxu0 %v70_v0  ;;  %v101_v5 = vld [vmem:[%s1231_s1 + $0x1f0] sm:$0xff]  ;;  %s841_s20 = sld [smem:[#allocation2 + $0x1]]  ;;  %v100_v9 = vld [vmem:[%s1231_s1 + $0x1e8] sm:$0xff]  ;;  %v178_v35 = vunpack.c.l.s4 %v771_v34  ;;  %vm498_vm0 = vcmask 254976   ;;  %s772_s15 = smov [#allocation6]  }
  0x12   :  { %v54_v2 = vld [vmem:[%s1231_s1 + $0x78] sm:$0xff]  ;;  %603 = vmatprep.subr.mxu1 %v102_v1  ;;  %v53_v6 = vld [vmem:[%s1231_s1 + $0x70] sm:$0xff]  ;;  %v52_v10 = vld [vmem:[%s1231_s1 + $0x68] sm:$0xff]  ;;  %v181_v46 = vshrl.u32 %v180_v36, 7  ;;  %s544_s16 = sshll.u32 %s772_s15, 4  ;;  %s545_s16 = int_to_ptr.vmem [resolvable:$true] %s544_s16 }
  0x13   :  { %v86_v3 = vld [vmem:[%s1231_s1 + $0x178] sm:$0xff]  ;;  %569 = vmatpush3.msra.mxu0 %v54_v2  ;;  %v85_v7 = vld [vmem:[%s1231_s1 + $0x170] sm:$0xff]  ;;  %v84_v11 = vld [vmem:[%s1231_s1 + $0x168] sm:$0xff]  ;;  %v179_v45 = vunpack.c.0.s8 %v178_v35  ;;  %s736_s17 = scalar_lea.vmem %s545_s16, 32  ;;  %p741_p6 = scmp.lt.s32.totalorder %s545_s16, %s545_s16 }
  0x14   :  { %604 = vmatpush3.msra.mxu1 %v86_v3  ;;  %570 = vmatprep.subr.mxu0 %v69_v4  ;;  %v67_v12 = vld [vmem:[%s1231_s1 + $0xe0] sm:$0xff]  ;;  %v66_v16 = vld [vmem:[%s1231_s1 + $0xd8] sm:$0xff]  ;;  %v65_v20 = vld [vmem:[%s1231_s1 + $0xd0] sm:$0xff]  ;;  %p737_p5 = scmp.ne.s32.totalorder %s545_s16, %s736_s17  ;;  %p742_p7 = scmp.lt.s32.totalorder %s736_s17, %s736_s17 }
  0x15   :  { %605 = vmatprep.subr.mxu1 %v101_v5  ;;  %571 = vmatpush3.msra.mxu0 %v53_v6  ;;  %v99_v13 = vld [vmem:[%s1231_s1 + $0x1e0] sm:$0xff]  ;;  %v98_v17 = vld [vmem:[%s1231_s1 + $0x1d8] sm:$0xff]  ;;  %v97_v21 = vld [vmem:[%s1231_s1 + $0x1d0] sm:$0xff]  ;;  %v957_v55 = vsub.s32 %v179_v45, %v181_v46 }
  0x16   :  { %606 = vmatpush3.msra.mxu1 %v85_v7  ;;  %572 = vmatprep.subr.mxu0 %v68_v8  ;;  %v51_v14 = vld [vmem:[%s1231_s1 + $0x60] sm:$0xff]  ;;  %v50_v18 = vld [vmem:[%s1231_s1 + $0x58] sm:$0xff]  ;;  %s502_s19 = ssub.f32 0.0, %s830_s13  ;;  %v49_v22 = vld [vmem:[%s1231_s1 + $0x50] sm:$0xff]  ;;  %p743_p8 = por %p742_p7, %p741_p6 }
  0x17   :  { %607 = vmatprep.subr.mxu1 %v100_v9  ;;  %v83_v15 = vld [vmem:[%s1231_s1 + $0x160] sm:$0xff]  ;;  %573 = vmatpush3.msra.mxu0 %v52_v10  ;;  %v82_v19 = vld [vmem:[%s1231_s1 + $0x158] sm:$0xff]  ;;  %s508_s25 = ssub.f32 0.0, %s841_s20  ;;  %v81_v23 = vld [vmem:[%s1231_s1 + $0x150] sm:$0xff] }
  0x18   :  { %608 = vmatpush3.msra.mxu1 %v84_v11  ;;  %574 = vmatprep.subr.mxu0 %v67_v12  ;;  %v503_v24 = vstv %s502_s19  ;;  %v64_v25 = vld [vmem:[%s1231_s1 + $0xc8] sm:$0xff]  ;;  %v63_v32 = vld [vmem:[%s1231_s1 + $0xc0] sm:$0xff]  ;;  %v62_v39 = vld [vmem:[%s1231_s1 + $0xb8] sm:$0xff]  ;;  %p744_p9 = pnand %p743_p8, %p737_p5 }
  0x19   :  { %609 = vmatprep.subr.mxu1 %v99_v13  ;;  %575 = vmatpush3.msra.mxu0 %v51_v14  ;;  %v96_v26 = vld [vmem:[%s1231_s1 + $0x1c8] sm:$0xff]  ;;  %v504_v27 = vmul.f32 1.442695, %v503_v24  ;;  %v509_v28 = vstv %s508_s25  ;;  %v95_v33 = vld [vmem:[%s1231_s1 + $0x1c0] sm:$0xff]  ;;  %v94_v40 = vld [vmem:[%s1231_s1 + $0x1b8] sm:$0xff] }
  0x1a   :  { %610 = vmatpush3.msra.mxu1 %v83_v15  ;;  %576 = vmatprep.subr.mxu0 %v66_v16  ;;  %v48_v29 = vld [vmem:[%s1231_s1 + $0x48] sm:$0xff]  ;;  %v510_v31 = vmul.f32 1.442695, %v509_v28  ;;  %v47_v37 = vld [vmem:[%s1231_s1 + $0x40] sm:$0xff]  ;;  %v46_v41 = vld [vmem:[%s1231_s1 + $0x38] sm:$0xff] }
  0x1b   :  { %611 = vmatprep.subr.mxu1 %v98_v17  ;;  %577 = vmatpush3.msra.mxu0 %v50_v18  ;;  %v80_v30 = vld [vmem:[%s1231_s1 + $0x148] sm:$0xff]  ;;  %720 = vpow2.f32 %v504_v27  ;;  %v79_v38 = vld [vmem:[%s1231_s1 + $0x140] sm:$0xff]  ;;  %v78_v42 = vld [vmem:[%s1231_s1 + $0x138] sm:$0xff] }
  0x1c   :  { %612 = vmatpush3.msra.mxu1 %v82_v19  ;;  %578 = vmatprep.subr.mxu0 %v65_v20  ;;  %722 = vpow2.f32 %v510_v31  ;;  %v61_v43 = vld [vmem:[%s1231_s1 + $0xb0] sm:$0xff]  ;;  %v60_v49 = vld [vmem:[%s1231_s1 + $0xa8] sm:$0xff]  ;;  %v59_v53 = vld [vmem:[%s1231_s1 + $0xa0] sm:$0xff] }
  0x1d   :  { %613 = vmatprep.subr.mxu1 %v97_v21  ;;  %579 = vmatpush3.msra.mxu0 %v49_v22  ;;  %v93_v44 = vld [vmem:[%s1231_s1 + $0x1b0] sm:$0xff]  ;;  %v92_v50 = vld [vmem:[%s1231_s1 + $0x1a8] sm:$0xff]  ;;  %v91_v54 = vld [vmem:[%s1231_s1 + $0x1a0] sm:$0xff] }
  0x1e   :  { %614 = vmatpush3.msra.mxu1 %v81_v23  ;;  %580 = vmatprep.subr.mxu0 %v64_v25  ;;  %v45_v47 = vld [vmem:[%s1231_s1 + $0x30] sm:$0xff]  ;;  %v44_v51 = vld [vmem:[%s1231_s1 + $0x28] sm:$0xff]  ;;  %v43_v56 = vld [vmem:[%s1231_s1 + $0x20] sm:$0xff] }
  0x1f   :  { %615 = vmatprep.subr.mxu1 %v96_v26  ;;  %581 = vmatpush3.msra.mxu0 %v48_v29  ;;  %v77_v48 = vld [vmem:[%s1231_s1 + $0x130] sm:$0xff]  ;;  %v76_v52 = vld [vmem:[%s1231_s1 + $0x128] sm:$0xff]  ;;  %v75_v57 = vld [vmem:[%s1231_s1 + $0x120] sm:$0xff] }
  0x20   :  { %616 = vmatpush3.msra.mxu1 %v80_v30  ;;  %582 = vmatprep.subr.mxu0 %v63_v32  ;;  %v37_v58 = vld [vmem:[%s1230_s0] sm:$0xff]  ;;  %v58_v59 = vld [vmem:[%s1231_s1 + $0x98] sm:$0xff]  ;;  %v57_v0 = vld [vmem:[%s1231_s1 + $0x90] sm:$0xff] }
  0x21   :  { %617 = vmatprep.subr.mxu1 %v95_v33  ;;  %583 = vmatpush3.msra.mxu0 %v47_v37  ;;  %v90_v60 = vld [vmem:[%s1231_s1 + $0x198] sm:$0xff]  ;;  %v176_v61 = vcombine.high %v37_v58, %v37_v58  ;;  %v89_v1 = vld [vmem:[%s1231_s1 + $0x190] sm:$0xff]  ;;  %v183_v2 = vrot.slane %v37_v58, %v957_v55  ;;  %v56_v7 = vld [vmem:[%s1231_s1 + $0x88] sm:$0xff] }
  0x22   :  { %618 = vmatpush3.msra.mxu1 %v79_v38  ;;  %584 = vmatprep.subr.mxu0 %v62_v39  ;;  %v42_v62 = vld [vmem:[%s1231_s1 + $0x18] sm:$0xff]  ;;  %v41_v4 = vld [vmem:[%s1231_s1 + $0x10] sm:$0xff]  ;;  %v88_v8 = vld [vmem:[%s1231_s1 + $0x188] sm:$0xff] }
  0x23   :  { %619 = vmatprep.subr.mxu1 %v94_v40  ;;  %585 = vmatpush3.msra.mxu0 %v46_v41  ;;  %v74_v63 = vld [vmem:[%s1231_s1 + $0x118] sm:$0xff]  ;;  %v73_v5 = vld [vmem:[%s1231_s1 + $0x110] sm:$0xff]  ;;  %v190_v9 = vrot.slane %v176_v61, %v957_v55  ;;  %v40_v10 = vld [vmem:[%s1231_s1 + $0x8] sm:$0xff]  ;;  %v191_v14 = vcombine.high %v183_v2, %v183_v2 }
  0x24   :  { %620 = vmatpush3.msra.mxu1 %v78_v42  ;;  %586 = vmatprep.subr.mxu0 %v61_v43  ;;  %v72_v11 = vld [vmem:[%s1231_s1 + $0x108] sm:$0xff]  ;;  %v55_v12 = vld [vmem:[%s1231_s1 + $0x80] sm:$0xff]  ;;  %v134_v18 = vld [vmem:[%s1231_s1 + $0x2f8] sm:$0xff] }
  0x25   :  { %621 = vmatprep.subr.mxu1 %v93_v44  ;;  %587 = vmatpush3.msra.mxu0 %v45_v47  ;;  %v87_v13 = vld [vmem:[%s1231_s1 + $0x180] sm:$0xff]  ;;  %v192_v17 = vcombine.high %v190_v9, %v190_v9  ;;  %v166_v19 = vld [vmem:[%s1231_s1 + $0x3f8] sm:$0xff]  ;;  %v133_v22 = vld [vmem:[%s1231_s1 + $0x2f0] sm:$0xff] }
  0x26   :  { %622 = vmatpush3.msra.mxu1 %v77_v48  ;;  %588 = vmatprep.subr.mxu0 %v60_v49  ;;  %v39_v15 = vld [vmem:[%s1231_s1] sm:$0xff]  ;;  %v118_v20 = vld [vmem:[%s1231_s1 + $0x278] sm:$0xff]  ;;  %v165_v23 = vld [vmem:[%s1231_s1 + $0x3f0] sm:$0xff] }
  0x27   :  { %623 = vmatprep.subr.mxu1 %v92_v50  ;;  %589 = vmatpush3.msra.mxu0 %v44_v51  ;;  %v71_v16 = vld [vmem:[%s1231_s1 + $0x100] sm:$0xff]  ;;  %v150_v21 = vld [vmem:[%s1231_s1 + $0x378] sm:$0xff]  ;;  %v117_v24 = vld [vmem:[%s1231_s1 + $0x270] sm:$0xff] }
  0x28   :  { %624 = vmatpush3.msra.mxu1 %v76_v52  ;;  %590 = vmatprep.subr.mxu0 %v59_v53  ;;  %v721_v3 = vpop.eup %720  ;;  %v149_v25 = vld [vmem:[%s1231_s1 + $0x370] sm:$0xff]  ;;  %v132_v26 = vld [vmem:[%s1231_s1 + $0x2e8] sm:$0xff]  ;;  %v131_v30 = vld [vmem:[%s1231_s1 + $0x2e0] sm:$0xff] }
  0x29   :  { %625 = vmatprep.subr.mxu1 %v91_v54  ;;  %591 = vmatpush3.msra.mxu0 %v43_v56  ;;  %v723_v6 = vpop.eup %722  ;;  %708 = vpush %v721_v3  ;;  %v164_v27 = vld [vmem:[%s1231_s1 + $0x3e8] sm:$0xff]  ;;  %v163_v31 = vld [vmem:[%s1231_s1 + $0x3e0] sm:$0xff]  ;;  %v130_v34 = vld [vmem:[%s1231_s1 + $0x2d8] sm:$0xff] }
  0x2a   :  { %626 = vmatpush3.msra.mxu1 %v75_v57  ;;  %592 = vmatprep.subr.mxu0 %v58_v59  ;;  %710 = vpush %v723_v6  ;;  %v116_v28 = vld [vmem:[%s1231_s1 + $0x268] sm:$0xff]  ;;  %v115_v32 = vld [vmem:[%s1231_s1 + $0x260] sm:$0xff]  ;;  %v162_v35 = vld [vmem:[%s1231_s1 + $0x3d8] sm:$0xff] }
  0x2b   :  { %627 = vmatprep.subr.mxu1 %v90_v60  ;;  %593 = vmatpush3.msra.mxu0 %v42_v62  ;;  %v148_v29 = vld [vmem:[%s1231_s1 + $0x368] sm:$0xff]  ;;  %v147_v33 = vld [vmem:[%s1231_s1 + $0x360] sm:$0xff]  ;;  %v114_v37 = vld [vmem:[%s1231_s1 + $0x258] sm:$0xff] }
  0x2c   :  { %628 = vmatpush3.msra.mxu1 %v74_v63  ;;  %594 = vmatprep.subr.mxu0 %v57_v0  ;;  %v146_v38 = vld [vmem:[%s1231_s1 + $0x358] sm:$0xff]  ;;  %v129_v39 = vld [vmem:[%s1231_s1 + $0x2d0] sm:$0xff]  ;;  %v128_v43 = vld [vmem:[%s1231_s1 + $0x2c8] sm:$0xff] }
  0x2d   :  { %629 = vmatprep.subr.mxu1 %v89_v1  ;;  %595 = vmatpush3.msra.mxu0 %v41_v4  ;;  %v161_v40 = vld [vmem:[%s1231_s1 + $0x3d0] sm:$0xff]  ;;  %v160_v44 = vld [vmem:[%s1231_s1 + $0x3c8] sm:$0xff]  ;;  %v127_v47 = vld [vmem:[%s1231_s1 + $0x2c0] sm:$0xff] }
  0x2e   :  { %630 = vmatpush3.msra.mxu1 %v73_v5  ;;  %596 = vmatprep.subr.mxu0 %v56_v7  ;;  %v113_v41 = vld [vmem:[%s1231_s1 + $0x250] sm:$0xff]  ;;  %v112_v45 = vld [vmem:[%s1231_s1 + $0x248] sm:$0xff]  ;;  %v159_v48 = vld [vmem:[%s1231_s1 + $0x3c0] sm:$0xff] }
  0x2f   :  { %631 = vmatprep.subr.mxu1 %v88_v8  ;;  %597 = vmatpush3.msra.mxu0 %v40_v10  ;;  %v145_v42 = vld [vmem:[%s1231_s1 + $0x350] sm:$0xff]  ;;  %v144_v46 = vld [vmem:[%s1231_s1 + $0x348] sm:$0xff]  ;;  %v111_v49 = vld [vmem:[%s1231_s1 + $0x240] sm:$0xff] }
  0x30   :  { %632 = vmatpush3.msra.mxu1 %v72_v11  ;;  %598 = vmatprep.subr.mxu0 %v55_v12  ;;  %v143_v50 = vld [vmem:[%s1231_s1 + $0x340] sm:$0xff]  ;;  %v126_v51 = vld [vmem:[%s1231_s1 + $0x2b8] sm:$0xff]  ;;  %v125_v56 = vld [vmem:[%s1231_s1 + $0x2b0] sm:$0xff] }
  0x31   :  { %633 = vmatprep.subr.mxu1 %v87_v13  ;;  %599 = vmatpush3.msra.mxu0 %v39_v15  ;;  %v158_v52 = vld [vmem:[%s1231_s1 + $0x3b8] sm:$0xff]  ;;  %v157_v57 = vld [vmem:[%s1231_s1 + $0x3b0] sm:$0xff]  ;;  %v124_v60 = vld [vmem:[%s1231_s1 + $0x2a8] sm:$0xff] }
  0x32   :  { %282 = vmatprep.mubr.f32.mxu0 %v191_v14  ;;  %634 = vmatpush3.msra.mxu1 %v71_v16  ;;  %v110_v53 = vld [vmem:[%s1231_s1 + $0x238] sm:$0xff]  ;;  %v109_v58 = vld [vmem:[%s1231_s1 + $0x230] sm:$0xff]  ;;  %v156_v61 = vld [vmem:[%s1231_s1 + $0x3a8] sm:$0xff] }
  0x33   :  { %283 = vmatmul.mubr.f32.vlgmr.msra.gmra.mxu0 %v183_v2  ;;  %352 = vmatprep.mubr.f32.mxu1 %v192_v17  ;;  %v142_v54 = vld [vmem:[%s1231_s1 + $0x338] sm:$0xff]  ;;  %v141_v59 = vld [vmem:[%s1231_s1 + $0x330] sm:$0xff]  ;;  %v38_v62 = vld [vmem:[%s1230_s0 + $0x8] sm:$0xff] }
  0x34   :  { %638 = vmatprep.subr.mxu0 %v134_v18  ;;  %673 = vmatprep.subr.mxu1 %v166_v19  ;;  %v108_v63 = vld [vmem:[%s1231_s1 + $0x228] sm:$0xff]  ;;  %v123_v1 = vld [vmem:[%s1231_s1 + $0x2a0] sm:$0xff]  ;;  %v193_v5 = vcombine.high %v38_v62, %v38_v62  ;;  %v122_v6 = vld [vmem:[%s1231_s1 + $0x298] sm:$0xff]  ;;  %v200_v12 = vrot.slane %v38_v62, %v957_v55 }
  0x35   :  { %353 = vmatmul.mubr.f32.vlgmr.msra.gmra.mxu1 %v190_v9  ;;  %639 = vmatpush3.msra.mxu0 %v118_v20  ;;  %v140_v0 = vld [vmem:[%s1231_s1 + $0x328] sm:$0xff]  ;;  %v155_v2 = vld [vmem:[%s1231_s1 + $0x3a0] sm:$0xff]  ;;  %v154_v7 = vld [vmem:[%s1231_s1 + $0x398] sm:$0xff] }
  0x36   :  { %674 = vmatpush3.msra.mxu1 %v150_v21  ;;  %640 = vmatprep.subr.mxu0 %v133_v22  ;;  %v107_v3 = vld [vmem:[%s1231_s1 + $0x220] sm:$0xff]  ;;  %v106_v8 = vld [vmem:[%s1231_s1 + $0x218] sm:$0xff]  ;;  %v121_v10 = vld [vmem:[%s1231_s1 + $0x290] sm:$0xff]  ;;  %v207_v15 = vrot.slane %v193_v5, %v957_v55  ;;  %v208_v21 = vcombine.high %v200_v12, %v200_v12 }
  0x37   :  { %675 = vmatprep.subr.mxu1 %v165_v23  ;;  %641 = vmatpush3.msra.mxu0 %v117_v24  ;;  %v139_v4 = vld [vmem:[%s1231_s1 + $0x320] sm:$0xff]  ;;  %v138_v9 = vld [vmem:[%s1231_s1 + $0x318] sm:$0xff]  ;;  %v153_v11 = vld [vmem:[%s1231_s1 + $0x390] sm:$0xff] }
  0x38   :  { %676 = vmatpush3.msra.mxu1 %v149_v25  ;;  %642 = vmatprep.subr.mxu0 %v132_v26  ;;  %v105_v13 = vld [vmem:[%s1231_s1 + $0x210] sm:$0xff]  ;;  %v120_v16 = vld [vmem:[%s1231_s1 + $0x288] sm:$0xff]  ;;  %v119_v19 = vld [vmem:[%s1231_s1 + $0x280] sm:$0xff]  ;;  %v209_v23 = vcombine.high %v207_v15, %v207_v15 }
  0x39   :  { %677 = vmatprep.subr.mxu1 %v164_v27  ;;  %643 = vmatpush3.msra.mxu0 %v116_v28  ;;  %v137_v14 = vld [vmem:[%s1231_s1 + $0x310] sm:$0xff]  ;;  %v152_v17 = vld [vmem:[%s1231_s1 + $0x388] sm:$0xff]  ;;  %v151_v20 = vld [vmem:[%s1231_s1 + $0x380] sm:$0xff] }
  0x3a   :  { %678 = vmatpush3.msra.mxu1 %v148_v29  ;;  %644 = vmatprep.subr.mxu0 %v131_v30  ;;  %v104_v18 = vld [vmem:[%s1231_s1 + $0x208] sm:$0xff]  ;;  %v103_v22 = vld [vmem:[%s1231_s1 + $0x200] sm:$0xff] }
  0x3b   :  { %679 = vmatprep.subr.mxu1 %v163_v31  ;;  %645 = vmatpush3.msra.mxu0 %v115_v32  ;;  %v136_v55 = vld [vmem:[%s1231_s1 + $0x308] sm:$0xff]  ;;  %v135_v24 = vld [vmem:[%s1231_s1 + $0x300] sm:$0xff] }
  0x3c   :  { %680 = vmatpush3.msra.mxu1 %v147_v33  ;;  %646 = vmatprep.subr.mxu0 %v130_v34  ;;  %v566_v29 = vld [vmem:[%s1232_s2] ss:$0 sm:$0xff] }
  0x3d   :  { %681 = vmatprep.subr.mxu1 %v162_v35  ;;  %647 = vmatpush3.msra.mxu0 %v114_v37 }
  0x3e   :  { %682 = vmatpush3.msra.mxu1 %v146_v38  ;;  %648 = vmatprep.subr.mxu0 %v129_v39 }
  0x3f   :  { %683 = vmatprep.subr.mxu1 %v161_v40  ;;  %649 = vmatpush3.msra.mxu0 %v113_v41  ;;  %v517_v40 = vand.u32 127, %v180_v36 }
  0x40   :  { %684 = vmatpush3.msra.mxu1 %v145_v42  ;;  %650 = vmatprep.subr.mxu0 %v128_v43  ;;  %v514_v43 = vld [vmem:[%s1233_s3] sm:$0x3] }
  0x41   :  { %685 = vmatprep.subr.mxu1 %v160_v44  ;;  %651 = vmatpush3.msra.mxu0 %v112_v45  ;;  %vm518_vm1 = vcmp.lt.s32.totalorder %v517_v40, 24 }
  0x42   :  { %686 = vmatpush3.msra.mxu1 %v144_v46  ;;  %652 = vmatprep.subr.mxu0 %v127_v47 }
  0x43   :  { %687 = vmatprep.subr.mxu1 %v159_v48  ;;  %653 = vmatpush3.msra.mxu0 %v111_v49 }
  0x44   :  { %688 = vmatpush3.msra.mxu1 %v143_v50  ;;  %654 = vmatprep.subr.mxu0 %v126_v51 }
  0x45   :  { %689 = vmatprep.subr.mxu1 %v158_v52  ;;  %655 = vmatpush3.msra.mxu0 %v110_v53 }
  0x46   :  { %690 = vmatpush3.msra.mxu1 %v142_v54  ;;  %656 = vmatprep.subr.mxu0 %v125_v56 }
  0x47   :  { %691 = vmatprep.subr.mxu1 %v157_v57  ;;  %657 = vmatpush3.msra.mxu0 %v109_v58 }
  0x48   :  { %692 = vmatpush3.msra.mxu1 %v141_v59  ;;  %658 = vmatprep.subr.mxu0 %v124_v60 }
  0x49   :  { %693 = vmatprep.subr.mxu1 %v156_v61  ;;  %659 = vmatpush3.msra.mxu0 %v108_v63 }
  0x4a   :  { %694 = vmatpush3.msra.mxu1 %v140_v0  ;;  %660 = vmatprep.subr.mxu0 %v123_v1 }
  0x4b   :  { %695 = vmatprep.subr.mxu1 %v155_v2  ;;  %661 = vmatpush3.msra.mxu0 %v107_v3 }
  0x4c   :  { %696 = vmatpush3.msra.mxu1 %v139_v4  ;;  %662 = vmatprep.subr.mxu0 %v122_v6 }
  0x4d   :  { %697 = vmatprep.subr.mxu1 %v154_v7  ;;  %663 = vmatpush3.msra.mxu0 %v106_v8 }
  0x4e   :  { %698 = vmatpush3.msra.mxu1 %v138_v9  ;;  %664 = vmatprep.subr.mxu0 %v121_v10 }
  0x4f   :  { %699 = vmatprep.subr.mxu1 %v153_v11  ;;  %665 = vmatpush3.msra.mxu0 %v105_v13 }
  0x50   :  { %700 = vmatpush3.msra.mxu1 %v137_v14  ;;  %666 = vmatprep.subr.mxu0 %v120_v16 }
  0x51   :  { %701 = vmatprep.subr.mxu1 %v152_v17  ;;  %667 = vmatpush3.msra.mxu0 %v104_v18 }
  0x52   :  { %702 = vmatpush3.msra.mxu1 %v136_v55  ;;  %668 = vmatprep.subr.mxu0 %v119_v19 }
  0x53   :  { %703 = vmatprep.subr.mxu1 %v151_v20  ;;  %669 = vmatpush3.msra.mxu0 %v103_v22 }
  0x54   :  { %422 = vmatprep.mubr.f32.mxu0 %v208_v21  ;;  %704 = vmatpush3.msra.mxu1 %v135_v24 }
  0x55   :  { %492 = vmatprep.mubr.f32.mxu1 %v209_v23  ;;  %423 = vmatmul.mubr.f32.vlgmr.msra.gmra.mxu0 %v200_v12 }
  0x56   :  { %493 = vmatmul.mubr.f32.vlgmr.msra.gmra.mxu1 %v207_v15 }
  0x5a   :  { %s709_s10 = spop %708 }
  0x5b   :  { %s711_s1 = spop %710  ;;  %s507_s11 = smul.f32 0.020833334, %s709_s10 }
  0x5c   :  { %s513_s12 = smul.f32 0.0625, %s711_s1 }
  0x5d   :  { %v519_v45 = vstv %s507_s11 }
  0x5e   :  { %v520_v46 = vstv %s513_s12 }
  0x5f   :  { %v521_v48 = vsel %vm518_vm1, %v519_v45, %v520_v46 }
  0xf3   :  { %v600_v25 = vpop.f32.mrf.mxu0 }
  0xf5   :  { %v635_v26 = vpop.f32.mrf.mxu1  ;;  %v601_v27 = vpop.f32.mrf.mxu0 }
  0xf6   :  { %v602_v28 = vadd.f32 %v601_v27, %v600_v25 }
  0xf7   :  { %v636_v30 = vpop.f32.mrf.mxu1 }
  0xf8   :  { %v285_v31 = vadd.f32 %v602_v28, %v566_v29  ;;  %v637_v32 = vadd.f32 %v636_v30, %v635_v26 }
  0xfa   :  { %v355_v38 = vadd.f32 %v637_v32, %v285_v31 }
 0x115   :  { %v670_v33 = vpop.f32.mrf.mxu0 }
 0x116   :  { %v705_v34 = vpop.f32.mrf.mxu1 }
 0x117   :  { %v671_v35 = vpop.f32.mrf.mxu0 }
 0x118   :  { %v706_v37 = vpop.f32.mrf.mxu1  ;;  %v672_v39 = vadd.f32 %v671_v35, %v670_v33 }
 0x119   :  { %v707_v42 = vadd.f32 %v706_v37, %v705_v34 }
 0x11a   :  { %v425_v41 = vadd.f32 %v672_v39, %v355_v38 }
 0x11c   :  { %v495_v44 = vadd.f32 %v707_v42, %v425_v41 }
 0x11e   :  { %v515_v47 = vsub.f32 %v495_v44, %v514_v43  ;;  %499 = vst.msk [vmem:[#allocation6] sm:$0x3] %vm498_vm0, %v495_v44 }
 0x120   :  { %v522_v49 = vmul.f32 %v515_v47, %v515_v47 }
 0x122   :  { %v523_v50 = vmul.f32 %v522_v49, %v521_v48 }
 0x124   :  { %v524_v51 = vsel %vm498_vm0, %v523_v50, 0.0 }
 0x125   :  { %525 = vadd.xlane.f32.xlu0 %v524_v51 }
 0x126   :  { %747 = shalt.err (!%p744_p9)
}
 0x127   :  { %547 = dma.vmem_to_hbm [thread:$0]  %s545_s16, 32, %s1235_s5, [#allocation3]  }
 0x128   :  { %s773_s22 = smov [#allocation7]  }
 0x1ae   :  { %v526_v36 = vpop.xlane.xlu0 %525 }
 0x1af   :  { %v527_v52 = vrot.slane %v526_v36, 4 }
 0x1b1   :  { %v528_v53 = vadd.f32 %v527_v52, %v526_v36 }
 0x1b3   :  { %v529_v54 = vrot.slane %v528_v53, 2 }
 0x1b5   :  { %v530_v56 = vadd.f32 %v529_v54, %v528_v53 }
 0x1b7   :  { %v531_v57 = vrot.slane %v530_v56, 1 }
 0x1b9   :  { %v532_v58 = vadd.f32 %v531_v57, %v530_v56 }
 0x1bb   :  { %712 = vpush %v532_v58 }
 0x1ec   :  { %s713_s19 = spop %712 }
 0x1ed   :  { %s534_s21 = sadd.f32 %s713_s19, %s830_s13 }
 0x1ef   :  { %s535_s0 = sadd.f32 %s841_s20, %s534_s21 }
 0x1f1   :  { %537 = sst [smem:[#allocation7]] %s535_s0 }
 0x1f2   :  { %555 = dma.smem_to_hbm %s773_s22, 16, %s1236_s6, [#allocation4]  }
 0x1f3   :  { %766 = dma.done.wait [#allocation3], 32  }
 0x1f4   :  { %767 = vsyncadd [#allocation3], 4294967264 }
 0x1f5   :  { %768 = dma.done.wait [#allocation4], 16  }
 0x1f6   :  { %769 = vsyncadd [#allocation4], 4294967280 }
 0x1f7   :  { %562 = sfence }
 0x1f8   :  { %563 = vsyncpa [#allocation3], 1 }
 0x1f9   :  { %564 = vsyncpa [#allocation4], 1 }
 0x1fa   :  { %565 = vsyncpa [#allocation5], 1 }

</bundles_post_ra>
